<compile_context>
chip_gen: v7x
topology: tpu7x:2x2x1
jax: 0.10.0
libtpu: 0.0.40
codegen_flags: <defaults>
</compile_context>

<pallas_src>
import jax
import jax.numpy as jnp
from jax.experimental import pallas as pl
from jax.experimental.pallas import tpu as pltpu


def linear_kernel(wb_ref, x_ref, o_ref):
    # wb_ref: SMEM (3,)        = [w0, w1, b]   (scalar-prefetched)
    # x_ref : VMEM (2, TR, TC) -- feature, row-tile (sublanes), lane-tile (lanes)
    # o_ref : VMEM (TR, TC)    -- lane-dense, full-width unmasked stores
    w0 = wb_ref[0]
    w1 = wb_ref[1]
    bias = wb_ref[2]
    # Pure VPU: full (TR, TC) operands, no MXU round-trip, no masked stores.
    o_ref[...] = x_ref[0] * w0 + x_ref[1] * w1 + bias


def _round_up(n, m):
    return ((n + m - 1) // m) * m


def custom_model_forward(x, w, b, *, min_pallas_batch=1024,
                         lane_tile=2048, row_tile=512):
    """x: (B, 2) f32, w: (2, 1) f32 (pre-transposed vs. PyTorch), b: (1,) f32.

    Returns (B, 1) f32, matching nn.Linear(2, 1).forward(x).
    """
    B, IN = x.shape
    assert IN == 2, "CustomModel expects in_features == 2"

    x = x.astype(jnp.float32)
    w = jnp.asarray(w, jnp.float32).reshape(IN, 1)
    b = jnp.asarray(b, jnp.float32).reshape(1)

    # ---- Tiny-batch bypass: launch overhead would dwarf ~2*B FLOPs. --------
    if B <= min_pallas_batch:
        return x @ w + b[None, :]

    wb = jnp.concatenate([w.reshape(-1), b])  # (3,) -> SMEM scalar prefetch

    # Lane-dense, feature-major layout: batch on the 128-lane axis.
    # TODO(synk): avoid this transpose by keeping activations feature-major.
    xt = x.T  # (2, B)

    # ---- Tiling: view the flat batch as (R, C) and tile rows. --------------
    C = min(lane_tile, _round_up(B, 128))      # lanes per row, multiple of 128
    R = pl.cdiv(B, C)                          # rows of the (R, C) view

    if R <= 8:
        # Single full-extent row block (block dim == array dim is legal even
        # when not a multiple of 8); no row padding at all.
        TR = R
        Rp = R
    else:
        # Multiple of 8, capped by row_tile (VMEM budget) and by ~R/8 so the
        # padded tail tile wastes <= ~12.5% of HBM traffic; also keeps the
        # "parallel" grid >= 2 steps so both v7x TensorCores get work.
        TR = max(8, min(row_tile, (R // 64) * 8))
        Rp = _round_up(R, TR)

    padded_b = Rp * C
    if padded_b != B:
        xt = jnp.pad(xt, ((0, 0), (0, padded_b - B)))
    x3 = xt.reshape(IN, Rp, C)                 # free row-major reshape
    n_tiles = Rp // TR

    out = pl.pallas_call(
        linear_kernel,
        out_shape=jax.ShapeDtypeStruct((Rp, C), jnp.float32),
        grid_spec=pltpu.PrefetchScalarGridSpec(
            num_scalar_prefetch=1,             # wb -> SMEM, passed first
            grid=(n_tiles,),
            in_specs=[
                pl.BlockSpec((IN, TR, C), lambda i, wb_ref: (0, i, 0)),
            ],
            out_specs=pl.BlockSpec((TR, C), lambda i, wb_ref: (i, 0)),
        ),
        compiler_params=pltpu.CompilerParams(
            dimension_semantics=("parallel",),
            # <= ~24 MiB double-buffered at (2,512,2048); raise v5e's 16 MiB
            # scoped default, stay within v7x's 64 MiB physical VMEM.
            vmem_limit_bytes=32 * 1024 * 1024,
        ),
    )(wb, x3)

    # Padded lanes evaluate to `bias` and are sliced off here.
    return out.reshape(-1)[:B].reshape(B, 1)


if __name__ == "__main__":
    # Deterministic init mimicking nn.Linear(2, 1) uniform(-1/sqrt(2), 1/sqrt(2)).
    key = jax.random.PRNGKey(0)
    k_x, k_w, k_b, k_x2 = jax.random.split(key, 4)

    in_features, out_features = 2, 1
    bound = 1.0 / (in_features ** 0.5)
    # PyTorch stores weight as (out, in); we keep it pre-transposed as (in, out).
    w = jax.random.uniform(
        k_w, (in_features, out_features), jnp.float32, minval=-bound, maxval=bound
    )
    b = jax.random.uniform(
        k_b, (out_features,), jnp.float32, minval=-bound, maxval=bound
    )

    # 1) Small batch (spec-sized): default path takes the tiny-batch bypass.
    batch = 8
    x = jax.random.normal(k_x, (batch, in_features), jnp.float32)
    y_bypass = jax.block_until_ready(custom_model_forward(x, w, b))
    y_ref = x @ w + b[None, :]
    assert y_bypass.shape == (batch, out_features), y_bypass.shape
    assert jnp.allclose(y_bypass, y_ref, atol=1e-5, rtol=1e-5)

    # 2) Same small batch forced through the Pallas kernel (exercise the kernel).
    y_pallas = jax.block_until_ready(
        custom_model_forward(x, w, b, min_pallas_batch=0)
    )
    assert y_pallas.shape == (batch, out_features), y_pallas.shape
    assert jnp.allclose(y_pallas, y_ref, atol=1e-5, rtol=1e-5)

    # 3) Ragged batch > bypass threshold: exercises padding + (R, C) tiling.
    batch2 = 4099
    x2 = jax.random.normal(k_x2, (batch2, in_features), jnp.float32)
    y2 = jax.block_until_ready(custom_model_forward(x2, w, b))
    y2_ref = x2 @ w + b[None, :]
    assert y2.shape == (batch2, out_features), y2.shape
    assert jnp.allclose(y2, y2_ref, atol=1e-5, rtol=1e-5)

    print("KERNEL_OK")
</pallas_src>

<mosaic_0001>
module attributes {stable_mosaic.version = 11 : i64} {
  func.func @linear_kernel(%arg0: i32, %arg1: memref<3xf32, #tpu.memory_space<smem>>, %arg2: memref<2x1x128xf32, #tpu.memory_space<vmem>>, %arg3: memref<1x128xf32, #tpu.memory_space<vmem>>) attributes {dimension_semantics = [#tpu.dimension_semantics<parallel>], iteration_bounds = array<i64: 1>, scalar_prefetch = 1 : i64, scratch_operands = 0 : i64, tpu.core_type = #tpu.core_type<tc>, window_params = [{transform_indices = @transform_0, window_bounds = array<i64: 2, 1, 128>}, {transform_indices = @transform_1, window_bounds = array<i64: 1, 128>}]} {
    %c0 = arith.constant 0 : index
    %0 = memref.load %arg1[%c0] : memref<3xf32, #tpu.memory_space<smem>>
    %c1 = arith.constant 1 : index
    %1 = memref.load %arg1[%c1] : memref<3xf32, #tpu.memory_space<smem>>
    %c2 = arith.constant 2 : index
    %2 = memref.load %arg1[%c2] : memref<3xf32, #tpu.memory_space<smem>>
    %c0_0 = arith.constant 0 : index
    %c0_1 = arith.constant 0 : index
    %c0_2 = arith.constant 0 : index
    %3 = vector.load %arg2[%c0_0, %c0_1, %c0_2] : memref<2x1x128xf32, #tpu.memory_space<vmem>>, vector<1x1x128xf32>
    %4 = vector.shape_cast %3 : vector<1x1x128xf32> to vector<1x128xf32>
    %5 = vector.broadcast %0 : f32 to vector<1x128xf32>
    %6 = arith.mulf %4, %5 : vector<1x128xf32>
    %c1_3 = arith.constant 1 : index
    %c0_4 = arith.constant 0 : index
    %c0_5 = arith.constant 0 : index
    %7 = vector.load %arg2[%c1_3, %c0_4, %c0_5] : memref<2x1x128xf32, #tpu.memory_space<vmem>>, vector<1x1x128xf32>
    %8 = vector.shape_cast %7 : vector<1x1x128xf32> to vector<1x128xf32>
    %9 = vector.broadcast %1 : f32 to vector<1x128xf32>
    %10 = arith.mulf %8, %9 : vector<1x128xf32>
    %11 = arith.addf %6, %10 : vector<1x128xf32>
    %12 = vector.broadcast %2 : f32 to vector<1x128xf32>
    %13 = arith.addf %11, %12 : vector<1x128xf32>
    %c0_6 = arith.constant 0 : index
    %c0_7 = arith.constant 0 : index
    %14 = vector.load %arg3[%c0_6, %c0_7] : memref<1x128xf32, #tpu.memory_space<vmem>>, vector<1x128xf32>
    tpu.vector_store %arg3[%c0_6, %c0_7], %13 {strides = array<i32>} : memref<1x128xf32, #tpu.memory_space<vmem>>, vector<1x128xf32>,
    return
  }
  func.func @transform_0(%arg0: i32, %arg1: memref<3xf32, #tpu.memory_space<smem>>) -> (i32, i32, i32) {
    %c0_i32 = arith.constant 0 : i32
    %c0_i32_0 = arith.constant 0 : i32
    %c0_i32_1 = arith.constant 0 : i32
    return %c0_i32, %arg0, %c0_i32_0 : i32, i32, i32
  }
  func.func @transform_1(%arg0: i32, %arg1: memref<3xf32, #tpu.memory_space<smem>>) -> (i32, i32) {
    %c0_i32 = arith.constant 0 : i32
    %c0_i32_0 = arith.constant 0 : i32
    return %arg0, %c0_i32 : i32, i32
  }
}

</mosaic_0001>

<bundles_post_ra>
// kernel: tpu_custom_call.1
= control target key start
LH: loop header
LB: loop body
LE: loop exit
PB: predicated region body
PF: predicated region fallthrough
CT: control target
= control target key end

     0   :  { %s130_s0 = inlined_call_operand.hbm [shape: f32[3], index: 0, kind: input, shape index: {}]   ;;  %s131_s1 = inlined_call_operand.vmem [shape: f32[2,1,128], index: 1, kind: input, shape index: {}]   ;;  %s132_s2 = inlined_call_operand.hbm [shape: f32[1,128], index: 2, kind: output, shape index: {}]  }
   0x1   :  { %s47_s11 = scalar_lea.hbm %s130_s0, 16 }
   0x2   :  { %p48_p0 = scmp.ne.s32.totalorder %s130_s0, %s47_s11  ;;  %p51_p1 = scmp.lt.u32.totalorder %s47_s11, %s130_s0 }
   0x4   :  { %p53_p2 = pnand %p51_p1, %p48_p0 }
   0x6   :  { %56 = shalt.err (!%p53_p2)  }
   0x7   :  { %s83_s16 = smov [#allocation3]  }
   0x8   :  { %8 = dma.hbm_to_smem %s130_s0, 16, %s83_s16, [#allocation2] }
   0x9   :  { %79 = dma.done.wait [#allocation2], 16 }
   0xa   :  { %80 = vsyncadd [#allocation2], 4294967280 }
   0xb   :  { %10 = sfence }
   0xc   :  { %s14_s19 = sld [smem:[#allocation3]]  ;;  %s42_s20 = sld [smem:[#allocation3 + $0x1]] }
   0xd   :  { %s43_s21 = sld [smem:[#allocation3 + $0x2]] }
   0xe   :  { %11 = vsyncpa [#allocation5], 0  ;;  %v17_v0 = vld [vmem:[%s131_s1] sm:$0x1]  ;;  %v44_v1 = vld [vmem:[%s131_s1 + $0x1] sm:$0x1] }
   0xf   :  { %s84_s0 = smov [#allocation4]  }
  0x10   :  { %s34_s26 = sshll.u32 %s84_s0, 4  ;;  %s35_s26 = int_to_ptr.vmem [resolvable:$true] %s34_s26 }
  0x11   :  { %s57_s27 = scalar_lea.vmem %s35_s26, 16  ;;  %s61_s28 = scalar_lea.vmem %s35_s26, 32 }
  0x12   :  { %v18_v2 = vstv %s14_s19  ;;  %v22_v3 = vstv %s42_s20  ;;  %p58_p3 = scmp.ne.s32.totalorder %s35_s26, %s57_s27  ;;  %p62_p4 = scmp.lt.s32.totalorder %s35_s26, %s35_s26 }
  0x13   :  { %v19_v4 = vmul.f32 %v18_v2, %v17_v0  ;;  %v23_v5 = vmul.f32 %v44_v1, %v22_v3  ;;  %v25_v6 = vstv %s43_s21  ;;  %p63_p5 = scmp.lt.s32.totalorder %s61_s28, %s57_s27 }
  0x15   :  { %v24_v7 = vadd.f32 %v23_v5, %v19_v4  ;;  %p64_p6 = por %p63_p5, %p62_p4 }
  0x17   :  { %v26_v8 = vadd.f32 %v25_v6, %v24_v7  ;;  %p65_p7 = pnand %p64_p6, %p58_p3 }
  0x19   :  { %27 = vst [vmem:[#allocation4] sm:$0x1] %v26_v8 }
  0x1a   :  { %68 = shalt.err (!%p65_p7)
}
  0x1b   :  { %s69_s30 = scalar_lea.hbm %s132_s2, 16 }
  0x1c   :  { %p70_p8 = scmp.ne.s32.totalorder %s132_s2, %s69_s30  ;;  %p73_p9 = scmp.lt.u32.totalorder %s69_s30, %s132_s2 }
  0x1e   :  { %p75_p10 = pnand %p73_p9, %p70_p8 }
  0x20   :  { %78 = shalt.err (!%p75_p10)
}
  0x21   :  { %37 = dma.vmem_to_hbm [thread:$0]  %s35_s26, 16, %s132_s2, [#allocation5]  }
  0x22   :  { %81 = dma.done.wait [#allocation5], 16  }
  0x23   :  { %82 = vsyncadd [#allocation5], 4294967280 }
  0x24   :  { %41 = vsyncpa [#allocation5], 1 }

</bundles_post_ra>
